<compile_context>
chip_gen: v7x
topology: tpu7x:2x2x1
jax: 0.10.0
libtpu: 0.0.40
codegen_flags: <defaults>
</compile_context>

<pallas_src>
import functools

import jax
import jax.numpy as jnp
from jax.experimental import pallas as pl
from jax.experimental.pallas import tpu as pltpu

IGNORE_INDEX = -100

# Fixed-shift logsumexp is numerically safe as long as exp(-2*softcap) is a normal f32
# (the dominant term can never be smaller than that), i.e. softcap <= ~43.
_FIXED_SHIFT_MAX_SOFTCAP = 40.0


def _round_up(x, m):
    return ((x + m - 1) // m) * m


def _hw_defaults():
    """Per-generation default (row tile, vocab tile, VMEM capacity)."""
    kind = ""
    try:
        kind = jax.devices()[0].device_kind.lower()
    except Exception:
        pass
    vmem_cap = None
    try:
        vmem_cap = int(pltpu.get_tpu_info().vmem_capacity_bytes)
    except Exception:
        vmem_cap = None

    if "v6" in kind:                    # ~918 TF/s / ~1.4 TB/s -> need ~650 FLOP/byte
        tn, cap = 768, 128 << 20
    elif "v5" in kind or "v4" in kind:  # ~240 FLOP/byte is enough
        tn, cap = 256, 128 << 20
    elif "7" in kind:                   # v7x: ~310 FLOP/byte, only 64 MiB VMEM per TC
        tn, cap = 512, 64 << 20
    else:                               # unknown: conservative
        tn, cap = 512, 64 << 20
    if vmem_cap is None:
        vmem_cap = cap
    return tn, 1024, vmem_cap


def _lce_kernel(*refs, softcap, use_fixed_shift, ignore_index,
                v_actual, v_padded, tile_v, has_bias):
    if has_bias:
        tgt_ref, e_ref, c_ref, b_ref = refs[:4]
        rest = refs[4:]
    else:
        tgt_ref, e_ref, c_ref = refs[:3]
        b_ref = None
        rest = refs[3:]
    nll_ref, valid_ref = rest[0], rest[1]
    if use_fixed_shift:
        m_sc = None
        l_sc, t_sc = rest[2], rest[3]
    else:
        m_sc, l_sc, t_sc = rest[2], rest[3], rest[4]

    j = pl.program_id(1)
    last_j = pl.num_programs(1) - 1

    @pl.when(j == 0)
    def _():
        if m_sc is not None:
            m_sc[...] = jnp.full_like(m_sc, -jnp.inf)
        l_sc[...] = jnp.zeros_like(l_sc)
        t_sc[...] = jnp.zeros_like(t_sc)

    # (tN, tV) logits in f32 on the MXU. Contract over the shared last (hidden) dim so
    # Mosaic feeds the MXU directly with the transposed-RHS form (no materialized c.T).
    logits = jax.lax.dot_general(
        e_ref[...], c_ref[...],
        dimension_numbers=(((1,), (1,)), ((), ())),
        preferred_element_type=jnp.float32)

    if has_bias:
        logits = logits + b_ref[...].astype(jnp.float32)

    if softcap is not None:
        inv_softcap = 1.0 / float(softcap)   # python-side reciprocal: no per-elem divide
        logits = float(softcap) * jnp.tanh(logits * inv_softcap)

    # Static iota (no per-step (tN,tV) int32 add / temporary).
    col_iota = jax.lax.broadcasted_iota(jnp.int32, logits.shape, 1)

    # Gather the target logit: compare static iota against the tile-local target index.
    tgt_local = tgt_ref[...] - j * tile_v          # (tN, 1) int32, cheap
    t_sc[...] += jnp.sum(jnp.where(col_iota == tgt_local, logits, 0.0),
                         axis=1, keepdims=True)

    def lse_update(lg):
        if use_fixed_shift:
            # softcap bounds |logits| < softcap, so a fixed shift is safe: no online max,
            # no per-step XLU row-max, no exp(m_old - m_new) rescale.
            l_sc[...] = l_sc[...] + jnp.sum(jnp.exp(lg - float(softcap)),
                                            axis=1, keepdims=True)
        else:
            m_new = jnp.maximum(m_sc[...], jnp.max(lg, axis=1, keepdims=True))
            alpha = jnp.exp(m_sc[...] - m_new)
            l_sc[...] = alpha * l_sc[...] + jnp.sum(jnp.exp(lg - m_new),
                                                    axis=1, keepdims=True)
            m_sc[...] = m_new

    if v_padded == v_actual:
        lse_update(logits)
    else:
        # Only the last vocab tile can contain padded columns; mask only there.
        # NOTE: mask is applied AFTER softcap (tanh(-inf) would clamp to -softcap).
        @pl.when(j != last_j)
        def _():
            lse_update(logits)

        @pl.when(j == last_j)
        def _():
            limit = v_actual - j * tile_v           # scalar
            lse_update(jnp.where(col_iota < limit, logits, -jnp.inf))

    @pl.when(j == last_j)
    def _():
        if use_fixed_shift:
            lse = float(softcap) + jnp.log(l_sc[...])
        else:
            lse = m_sc[...] + jnp.log(l_sc[...])
        is_valid = tgt_ref[...] != ignore_index
        nll_ref[...] = jnp.where(is_valid, lse - t_sc[...], 0.0)
        valid_ref[...] = is_valid.astype(jnp.float32)


def linear_cross_entropy(e, c, targets, bias=None, *,
                         ignore_index=IGNORE_INDEX, softcap=None,
                         reduction="mean",
                         tile_n=None, tile_v=None,
                         compute_dtype=jnp.bfloat16, c_buffers=2):
    """JAX/Pallas forward of LinearCrossEntropy (shift=0).

    e: (..., D) embeddings, c: (V, D) classifier, targets: (...,) int, bias: (V,) or None.

    Defaults: bf16 compute (f32 MXU accumulation) — pass compute_dtype=jnp.float32 for
    bit-exact-vs-f32 numerics, or compute_dtype=None to keep the input dtype.
    tile_n/tile_v default per TPU generation from the HBM/MXU roofline and are shrunk
    automatically to fit ~80% of the physical VMEM (64 MiB per TC on v7x).
    Preconditions: targets must be in [0, V) or equal to ignore_index (not checked).
    With reduction='mean' and zero valid targets the result is NaN (0/0), matching torch.
    """
    D = e.shape[-1]
    V = c.shape[0]
    e2 = e.reshape(-1, D)
    t2 = targets.reshape(-1).astype(jnp.int32)
    N = e2.shape[0]

    if compute_dtype is not None:
        e2 = e2.astype(compute_dtype)
        c = c.astype(compute_dtype)

    has_bias = bias is not None
    e_isz = jnp.dtype(e2.dtype).itemsize
    c_isz = jnp.dtype(c.dtype).itemsize

    tn_default, tv_default, vmem_cap = _hw_defaults()
    if tile_n is None:
        tile_n = tn_default
    if tile_v is None:
        tile_v = tv_default

    # ---- tile selection ----
    # Sublane multiple for the packed row dim: f32 -> 8, bf16 -> 16, int8/fp8 -> 32.
    sub = max(8, 32 // e_isz)
    tN = _round_up(min(int(tile_n), _round_up(N, sub)), sub)
    tV = min(_round_up(int(tile_v), 128), _round_up(V, 128))

    n_bufs = max(2, int(c_buffers))

    def vmem_est(tn, tv):
        return (2 * tn * D * e_isz                    # e block (double-buffered)
                + n_bufs * tv * D * c_isz             # streamed c buffers
                + 2 * tn * 4                          # targets
                + (2 * tv * 4 if has_bias else 0)     # bias tile
                + 2 * 2 * tn * 4                      # two (tn,1) f32 outputs
                + 3 * tn * 4                          # scratch accumulators
                + 2 * tn * tv * 4)                    # f32 logits + elementwise temps

    # Derive the tile plan from the real VMEM budget instead of hoping it fits.
    budget = int(0.80 * vmem_cap)
    while vmem_est(tN, tV) > budget and tV > 128:
        tV = max(128, _round_up(tV // 2, 128))
    while vmem_est(tN, tV) > budget and tN > sub:
        tN = max(sub, _round_up(tN // 2, sub))

    Np = _round_up(N, tN)
    Vp = _round_up(V, tV)

    if Np != N:
        e2 = jnp.pad(e2, ((0, Np - N), (0, 0)))
        t2 = jnp.pad(t2, (0, Np - N), constant_values=ignore_index)
    if Vp != V:
        c = jnp.pad(c, ((0, Vp - V), (0, 0)))
        if has_bias:
            bias = jnp.pad(bias, (0, Vp - V))

    t2 = t2.reshape(Np, 1)

    # ---- BlockSpecs ----
    if n_bufs > 2:
        c_spec = pl.BlockSpec((tV, D), lambda i, j: (j, 0),
                              pipeline_mode=pl.Buffered(n_bufs))
    else:
        c_spec = pl.BlockSpec((tV, D), lambda i, j: (j, 0))

    inputs = [t2, e2, c]
    in_specs = [
        pl.BlockSpec((tN, 1), lambda i, j: (i, 0)),   # targets
        pl.BlockSpec((tN, D), lambda i, j: (i, 0)),   # e (row tile, resident over vocab)
        c_spec,                                       # c (streamed vocab tile)
    ]
    if has_bias:
        inputs.append(bias.reshape(1, Vp))
        in_specs.append(pl.BlockSpec((1, tV), lambda i, j: (0, j)))

    use_fixed_shift = (softcap is not None
                       and float(softcap) <= _FIXED_SHIFT_MAX_SOFTCAP)

    scratch_shapes = [pltpu.VMEM((tN, 1), jnp.float32)] * (2 if use_fixed_shift else 3)

    vmem_limit = min(int(0.9 * vmem_cap),
                     max(32 * 1024 * 1024, (vmem_est(tN, tV) * 3) // 2))

    num_row_tiles = Np // tN
    cost = pl.CostEstimate(
        flops=int(2 * Np * Vp * D),
        transcendentals=int(Np * Vp * (2 if softcap is not None else 1)),
        bytes_accessed=int(num_row_tiles * Vp * D * c_isz   # c streamed per row tile
                           + Np * D * e_isz + Np * 4        # e + targets
                           + 2 * Np * 4                     # outputs
                           + (num_row_tiles * Vp * 4 if has_bias else 0)))

    kernel = functools.partial(
        _lce_kernel, softcap=softcap, use_fixed_shift=use_fixed_shift,
        ignore_index=ignore_index, v_actual=V, v_padded=Vp, tile_v=tV,
        has_bias=has_bias)

    nll, valid = pl.pallas_call(
        kernel,
        out_shape=(jax.ShapeDtypeStruct((Np, 1), jnp.float32),
                   jax.ShapeDtypeStruct((Np, 1), jnp.float32)),
        grid_spec=pltpu.PrefetchScalarGridSpec(
            num_scalar_prefetch=0,
            grid=(num_row_tiles, Vp // tV),
            in_specs=in_specs,
            out_specs=[pl.BlockSpec((tN, 1), lambda i, j: (i, 0)),   # per-row nll
                       pl.BlockSpec((tN, 1), lambda i, j: (i, 0))],  # valid mask
            scratch_shapes=scratch_shapes,
        ),
        compiler_params=pltpu.CompilerParams(
            dimension_semantics=("parallel", "arbitrary"),
            vmem_limit_bytes=int(vmem_limit)),
        cost_estimate=cost,
    )(*inputs)

    nll = nll[:N, 0]
    valid = valid[:N, 0]

    if reduction == "mean":
        # NOTE: all-ignored input gives 0/0 = NaN, matching torch semantics.
        return jnp.sum(nll) / jnp.sum(valid)
    elif reduction == "sum":
        return jnp.sum(nll)
    else:  # 'none'
        return nll.reshape(targets.shape)


# TODO(synk): backward-pass options (filter_eps, accum_*_fp32, filter_*_grad), shift,
# vocab_parallel_options and impl selection are training/distributed features with no
# forward-pass Pallas equivalent here; only the forward loss is implemented.


def _reference(e, c, targets, bias=None, ignore_index=IGNORE_INDEX, softcap=None,
               reduction="mean", compute_dtype=None):
    D = e.shape[-1]
    e2 = e.reshape(-1, D)
    t2 = targets.reshape(-1)
    if compute_dtype is not None:
        e2 = e2.astype(compute_dtype)
        c = c.astype(compute_dtype)
    logits = e2.astype(jnp.float32) @ c.astype(jnp.float32).T
    if bias is not None:
        logits = logits + bias.astype(jnp.float32)[None, :]
    if softcap is not None:
        logits = softcap * jnp.tanh(logits / softcap)
    lse = jax.scipy.special.logsumexp(logits, axis=-1)
    tgt_logit = jnp.take_along_axis(
        logits, jnp.clip(t2, 0, c.shape[0] - 1)[:, None], axis=-1)[:, 0]
    valid = t2 != ignore_index
    nll = jnp.where(valid, lse - tgt_logit, 0.0)
    if reduction == "mean":
        return jnp.sum(nll) / jnp.sum(valid)
    if reduction == "sum":
        return jnp.sum(nll)
    return nll.reshape(targets.shape)


if __name__ == "__main__":
    key = jax.random.PRNGKey(0)
    k_e, k_c, k_t, k_b = jax.random.split(key, 4)

    B, T, D, V = 2, 8, 32, 256
    e = jax.random.normal(k_e, (B, T, D), dtype=jnp.float32)
    c = jax.random.normal(k_c, (V, D), dtype=jnp.float32) * 0.1
    bias = jax.random.normal(k_b, (V,), dtype=jnp.float32) * 0.01
    targets = jax.random.randint(k_t, (B, T), 0, V, dtype=jnp.int32)
    targets = targets.at[0, 0].set(IGNORE_INDEX)

    # Case 1: exact f32 compute, bias, vocab multiple of 128, one ignored token.
    loss = linear_cross_entropy(e, c, targets, bias, compute_dtype=jnp.float32)
    loss = jax.block_until_ready(loss)
    ref = _reference(e, c, targets, bias, compute_dtype=jnp.float32)
    assert jnp.allclose(loss, ref, rtol=1e-5, atol=1e-5), (loss, ref)

    # Case 2: default bf16 compute, no bias, softcap (fixed-shift logsumexp path),
    # vocab NOT a multiple of the tile (exercises last-tile pad masking).
    V2 = 200
    c2 = jax.random.normal(k_c, (V2, D), dtype=jnp.float32) * 0.1
    targets2 = jax.random.randint(k_t, (B, T), 0, V2, dtype=jnp.int32)
    loss2 = linear_cross_entropy(e, c2, targets2, None,
                                 ignore_index=IGNORE_INDEX, softcap=30.0,
                                 reduction="mean")
    loss2 = jax.block_until_ready(loss2)
    ref2 = _reference(e, c2, targets2, None, softcap=30.0,
                      compute_dtype=jnp.bfloat16)
    assert jnp.allclose(loss2, ref2, rtol=1e-3, atol=1e-3), (loss2, ref2)

    # Case 3: multiple vocab tiles (online logsumexp across steps), padded last tile,
    # reduction='none', default bf16 compute.
    V3 = 300
    c3 = jax.random.normal(k_c, (V3, D), dtype=jnp.float32) * 0.1
    targets3 = jax.random.randint(k_t, (B, T), 0, V3, dtype=jnp.int32)
    targets3 = targets3.at[1, 3].set(IGNORE_INDEX)
    nll3 = linear_cross_entropy(e, c3, targets3, None,
                                reduction="none", tile_v=128)
    nll3 = jax.block_until_ready(nll3)
    ref3 = _reference(e, c3, targets3, None, reduction="none",
                      compute_dtype=jnp.bfloat16)
    assert nll3.shape == targets3.shape
    assert jnp.allclose(nll3, ref3, rtol=1e-3, atol=1e-3), (nll3, ref3)

    print("KERNEL_OK")
</pallas_src>

<mosaic_0001>
module attributes {stable_mosaic.version = 11 : i64} {
  func.func @_lce_kernel(%arg0: i32, %arg1: i32, %arg2: memref<16x1xi32, #tpu.memory_space<vmem>>, %arg3: memref<16x32xf32, #tpu.memory_space<vmem>>, %arg4: memref<256x32xf32, #tpu.memory_space<vmem>>, %arg5: memref<1x256xf32, #tpu.memory_space<vmem>>, %arg6: memref<16x1xf32, #tpu.memory_space<vmem>>, %arg7: memref<16x1xf32, #tpu.memory_space<vmem>>, %arg8: memref<16x1xf32, #tpu.memory_space<vmem>>, %arg9: memref<16x1xf32, #tpu.memory_space<vmem>>, %arg10: memref<16x1xf32, #tpu.memory_space<vmem>>) attributes {dimension_semantics = [#tpu.dimension_semantics<parallel>, #tpu.dimension_semantics<arbitrary>], iteration_bounds = array<i64: 1, 1>, scalar_prefetch = 0 : i64, scratch_operands = 3 : i64, tpu.core_type = #tpu.core_type<tc>, window_params = [{transform_indices = @transform_0, window_bounds = array<i64: 16, 1>}, {transform_indices = @transform_1, window_bounds = array<i64: 16, 32>}, {transform_indices = @transform_2, window_bounds = array<i64: 256, 32>}, {transform_indices = @transform_3, window_bounds = array<i64: 1, 256>}, {transform_indices = @transform_4, window_bounds = array<i64: 16, 1>}, {transform_indices = @transform_5, window_bounds = array<i64: 16, 1>}]} {
    %c0_i32 = arith.constant 0 : i32
    %0 = arith.cmpi eq, %arg1, %c0_i32 : i32
    %1 = arith.extui %0 : i1 to i32
    %c0_i32_0 = arith.constant 0 : i32
    %2 = arith.cmpi ne, %1, %c0_i32_0 : i32
    scf.if %2 {
      %cst_28 = arith.constant 0xFF800000 : f32
      %43 = vector.broadcast %cst_28 : f32 to vector<16x1xf32>
      %c0_29 = arith.constant 0 : index
      %c0_30 = arith.constant 0 : index
      %44 = vector.load %arg8[%c0_29, %c0_30] : memref<16x1xf32, #tpu.memory_space<vmem>>, vector<16x1xf32>
      tpu.vector_store %arg8[%c0_29, %c0_30], %43 {strides = array<i32>} : memref<16x1xf32, #tpu.memory_space<vmem>>, vector<16x1xf32>,
      %cst_31 = arith.constant 0.000000e+00 : f32
      %45 = vector.broadcast %cst_31 : f32 to vector<16x1xf32>
      %c0_32 = arith.constant 0 : index
      %c0_33 = arith.constant 0 : index
      %46 = vector.load %arg9[%c0_32, %c0_33] : memref<16x1xf32, #tpu.memory_space<vmem>>, vector<16x1xf32>
      tpu.vector_store %arg9[%c0_32, %c0_33], %45 {strides = array<i32>} : memref<16x1xf32, #tpu.memory_space<vmem>>, vector<16x1xf32>,
      %cst_34 = arith.constant 0.000000e+00 : f32
      %47 = vector.broadcast %cst_34 : f32 to vector<16x1xf32>
      %c0_35 = arith.constant 0 : index
      %c0_36 = arith.constant 0 : index
      %48 = vector.load %arg10[%c0_35, %c0_36] : memref<16x1xf32, #tpu.memory_space<vmem>>, vector<16x1xf32>
      tpu.vector_store %arg10[%c0_35, %c0_36], %47 {strides = array<i32>} : memref<16x1xf32, #tpu.memory_space<vmem>>, vector<16x1xf32>,
    } else {
    }
    %c0 = arith.constant 0 : index
    %c0_1 = arith.constant 0 : index
    %3 = vector.load %arg3[%c0, %c0_1] : memref<16x32xf32, #tpu.memory_space<vmem>>, vector<16x32xf32>
    %c0_2 = arith.constant 0 : index
    %c0_3 = arith.constant 0 : index
    %4 = vector.load %arg4[%c0_2, %c0_3] : memref<256x32xf32, #tpu.memory_space<vmem>>, vector<256x32xf32>
    %cst = arith.constant dense<0.000000e+00> : vector<16x256xf32>
    %5 = tpu.matmul %3, %4, %cst {dimension_numbers = #tpu.dot_dimension_numbers<[1], [1], [0], [0], [0, 0, 1, 0], [], []>} : vector<16x32xf32>, vector<256x32xf32>, vector<16x256xf32> -> vector<16x256xf32>
    %c0_4 = arith.constant 0 : index
    %c0_5 = arith.constant 0 : index
    %6 = vector.load %arg5[%c0_4, %c0_5] : memref<1x256xf32, #tpu.memory_space<vmem>>, vector<1x256xf32>
    %7 = vector.broadcast %6 : vector<1x256xf32> to vector<16x256xf32>
    %8 = arith.addf %5, %7 : vector<16x256xf32>
    %9 = tpu.iota {dimensions = array<i32: 1>} : vector<16x256xi32>
    %c0_6 = arith.constant 0 : index
    %c0_7 = arith.constant 0 : index
    %10 = vector.load %arg2[%c0_6, %c0_7] : memref<16x1xi32, #tpu.memory_space<vmem>>, vector<16x1xi32>
    %c256_i32 = arith.constant 256 : i32
    %11 = arith.muli %arg1, %c256_i32 : i32
    %12 = vector.broadcast %11 : i32 to vector<16x1xi32>
    %13 = arith.subi %10, %12 : vector<16x1xi32>
    %c0_8 = arith.constant 0 : index
    %c0_9 = arith.constant 0 : index
    %14 = vector.load %arg10[%c0_8, %c0_9] : memref<16x1xf32, #tpu.memory_space<vmem>>, vector<16x1xf32>
    %15 = vector.broadcast %13 : vector<16x1xi32> to vector<16x256xi32>
    %16 = arith.cmpi eq, %9, %15 : vector<16x256xi32>
    %cst_10 = arith.constant 0.000000e+00 : f32
    %17 = vector.broadcast %cst_10 : f32 to vector<16x256xf32>
    %18 = arith.select %16, %8, %17 : vector<16x256xi1>, vector<16x256xf32>
    %cst_11 = arith.constant dense<0.000000e+00> : vector<16xf32>
    %19 = vector.multi_reduction <add>, %18, %cst_11 [1] : vector<16x256xf32> to vector<16xf32>
    %20 = vector.shape_cast %19 : vector<16xf32> to vector<16x1xf32>
    %21 = arith.addf %14, %20 : vector<16x1xf32>
    %c0_12 = arith.constant 0 : index
    %c0_13 = arith.constant 0 : index
    %22 = vector.load %arg10[%c0_12, %c0_13] : memref<16x1xf32, #tpu.memory_space<vmem>>, vector<16x1xf32>
    tpu.vector_store %arg10[%c0_12, %c0_13], %21 {strides = array<i32>} : memref<16x1xf32, #tpu.memory_space<vmem>>, vector<16x1xf32>,
    %c0_14 = arith.constant 0 : index
    %c0_15 = arith.constant 0 : index
    %23 = vector.load %arg8[%c0_14, %c0_15] : memref<16x1xf32, #tpu.memory_space<vmem>>, vector<16x1xf32>
    %cst_16 = arith.constant dense<0xFF800000> : vector<16xf32>
    %24 = vector.multi_reduction <maximumf>, %8, %cst_16 [1] : vector<16x256xf32> to vector<16xf32>
    %25 = vector.shape_cast %24 : vector<16xf32> to vector<16x1xf32>
    %26 = arith.maximumf %23, %25 : vector<16x1xf32>
    %c0_17 = arith.constant 0 : index
    %c0_18 = arith.constant 0 : index
    %27 = vector.load %arg8[%c0_17, %c0_18] : memref<16x1xf32, #tpu.memory_space<vmem>>, vector<16x1xf32>
    %28 = arith.subf %27, %26 : vector<16x1xf32>
    %29 = math.exp %28 : vector<16x1xf32>
    %c0_19 = arith.constant 0 : index
    %c0_20 = arith.constant 0 : index
    %30 = vector.load %arg9[%c0_19, %c0_20] : memref<16x1xf32, #tpu.memory_space<vmem>>, vector<16x1xf32>
    %31 = arith.mulf %29, %30 : vector<16x1xf32>
    %32 = vector.broadcast %26 : vector<16x1xf32> to vector<16x256xf32>
    %33 = arith.subf %8, %32 : vector<16x256xf32>
    %34 = math.exp %33 : vector<16x256xf32>
    %cst_21 = arith.constant dense<0.000000e+00> : vector<16xf32>
    %35 = vector.multi_reduction <add>, %34, %cst_21 [1] : vector<16x256xf32> to vector<16xf32>
    %36 = vector.shape_cast %35 : vector<16xf32> to vector<16x1xf32>
    %37 = arith.addf %31, %36 : vector<16x1xf32>
    %c0_22 = arith.constant 0 : index
    %c0_23 = arith.constant 0 : index
    %38 = vector.load %arg9[%c0_22, %c0_23] : memref<16x1xf32, #tpu.memory_space<vmem>>, vector<16x1xf32>
    tpu.vector_store %arg9[%c0_22, %c0_23], %37 {strides = array<i32>} : memref<16x1xf32, #tpu.memory_space<vmem>>, vector<16x1xf32>,
    %c0_24 = arith.constant 0 : index
    %c0_25 = arith.constant 0 : index
    %39 = vector.load %arg8[%c0_24, %c0_25] : memref<16x1xf32, #tpu.memory_space<vmem>>, vector<16x1xf32>
    tpu.vector_store %arg8[%c0_24, %c0_25], %26 {strides = array<i32>} : memref<16x1xf32, #tpu.memory_space<vmem>>, vector<16x1xf32>,
    %c0_i32_26 = arith.constant 0 : i32
    %40 = arith.cmpi eq, %arg1, %c0_i32_26 : i32
    %41 = arith.extui %40 : i1 to i32
    %c0_i32_27 = arith.constant 0 : i32
    %42 = arith.cmpi ne, %41, %c0_i32_27 : i32
    scf.if %42 {
      %c0_28 = arith.constant 0 : index
      %c0_29 = arith.constant 0 : index
      %43 = vector.load %arg8[%c0_28, %c0_29] : memref<16x1xf32, #tpu.memory_space<vmem>>, vector<16x1xf32>
      %c0_30 = arith.constant 0 : index
      %c0_31 = arith.constant 0 : index
      %44 = vector.load %arg9[%c0_30, %c0_31] : memref<16x1xf32, #tpu.memory_space<vmem>>, vector<16x1xf32>
      %45 = math.log %44 : vector<16x1xf32>
      %46 = arith.addf %43, %45 : vector<16x1xf32>
      %c0_32 = arith.constant 0 : index
      %c0_33 = arith.constant 0 : index
      %47 = vector.load %arg2[%c0_32, %c0_33] : memref<16x1xi32, #tpu.memory_space<vmem>>, vector<16x1xi32>
      %c-100_i32 = arith.constant -100 : i32
      %48 = vector.broadcast %c-100_i32 : i32 to vector<16x1xi32>
      %49 = arith.cmpi ne, %47, %48 : vector<16x1xi32>
      %c0_34 = arith.constant 0 : index
      %c0_35 = arith.constant 0 : index
      %50 = vector.load %arg10[%c0_34, %c0_35] : memref<16x1xf32, #tpu.memory_space<vmem>>, vector<16x1xf32>
      %51 = arith.subf %46, %50 : vector<16x1xf32>
      %cst_36 = arith.constant 0.000000e+00 : f32
      %52 = vector.broadcast %cst_36 : f32 to vector<16x1xf32>
      %53 = arith.select %49, %51, %52 : vector<16x1xi1>, vector<16x1xf32>
      %c0_37 = arith.constant 0 : index
      %c0_38 = arith.constant 0 : index
      %54 = vector.load %arg6[%c0_37, %c0_38] : memref<16x1xf32, #tpu.memory_space<vmem>>, vector<16x1xf32>
      tpu.vector_store %arg6[%c0_37, %c0_38], %53 {strides = array<i32>} : memref<16x1xf32, #tpu.memory_space<vmem>>, vector<16x1xf32>,
      %55 = arith.extui %49 : vector<16x1xi1> to vector<16x1xi32>
      %56 = arith.sitofp %55 : vector<16x1xi32> to vector<16x1xf32>
      %c0_39 = arith.constant 0 : index
      %c0_40 = arith.constant 0 : index
      %57 = vector.load %arg7[%c0_39, %c0_40] : memref<16x1xf32, #tpu.memory_space<vmem>>, vector<16x1xf32>
      tpu.vector_store %arg7[%c0_39, %c0_40], %56 {strides = array<i32>} : memref<16x1xf32, #tpu.memory_space<vmem>>, vector<16x1xf32>,
    } else {
    }
    return
  }
  func.func @transform_0(%arg0: i32, %arg1: i32) -> (i32, i32) {
    %c0_i32 = arith.constant 0 : i32
    %c0_i32_0 = arith.constant 0 : i32
    return %arg0, %c0_i32 : i32, i32
  }
  func.func @transform_1(%arg0: i32, %arg1: i32) -> (i32, i32) {
    %c0_i32 = arith.constant 0 : i32
    %c0_i32_0 = arith.constant 0 : i32
    return %arg0, %c0_i32 : i32, i32
  }
  func.func @transform_2(%arg0: i32, %arg1: i32) -> (i32, i32) {
    %c0_i32 = arith.constant 0 : i32
    %c0_i32_0 = arith.constant 0 : i32
    return %arg1, %c0_i32 : i32, i32
  }
  func.func @transform_3(%arg0: i32, %arg1: i32) -> (i32, i32) {
    %c0_i32 = arith.constant 0 : i32
    %c0_i32_0 = arith.constant 0 : i32
    return %c0_i32, %arg1 : i32, i32
  }
  func.func @transform_4(%arg0: i32, %arg1: i32) -> (i32, i32) {
    %c0_i32 = arith.constant 0 : i32
    %c0_i32_0 = arith.constant 0 : i32
    return %arg0, %c0_i32 : i32, i32
  }
  func.func @transform_5(%arg0: i32, %arg1: i32) -> (i32, i32) {
    %c0_i32 = arith.constant 0 : i32
    %c0_i32_0 = arith.constant 0 : i32
    return %arg0, %c0_i32 : i32, i32
  }
}

</mosaic_0001>

<bundles_post_ra>
// kernel: tpu_custom_call.1
= control target key start
LH: loop header
LB: loop body
LE: loop exit
PB: predicated region body
PF: predicated region fallthrough
CT: control target
= control target key end

     0   :  { %vm76_vm0 = vcmask 261120   ;;  %vm23_vm2 = vcmask 7168   ;;  %v542_v51 = vmov 0   ;;  %v543_v54 = vmov 0.0   ;;  %s812_s2 = inlined_call_operand.vmem [shape: f32[256,32], index: 2, kind: input, shape index: {}]   ;;  %s813_s1 = inlined_call_operand.vmem [shape: f32[16,32], index: 1, kind: input, shape index: {}]   ;;  %s814_s0 = inlined_call_operand.vmem [shape: s32[16,1], index: 0, kind: input, shape index: {}]   ;;  %s815_s5 = inlined_call_operand.vmem [shape: f32[16,1], index: 5, kind: output, shape index: {1}]   ;;  %s816_s3 = inlined_call_operand.vmem [shape: f32[1,256], index: 3, kind: input, shape index: {}]   ;;  %s817_s4 = inlined_call_operand.vmem [shape: f32[16,1], index: 4, kind: output, shape index: {0}]  }
   0x1   :  { %v48_v0 = vld [vmem:[%s812_s2 + $0x80] sm:$0xff]  ;;  %v49_v1 = vld [vmem:[%s812_s2 + $0x88] sm:$0xff]  ;;  %vm583_vm1 = vmpackc.low %vm76_vm0, %vm76_vm0  ;;  %525 = vset.pattern.permute.xlu0 %v542_v51  ;;  %26 = vst.msk [vmem:[#allocation3] sm:$0xff] %vm23_vm2, %v543_v54  ;;  %524 = vset.pattern.permute.xlu1 %v542_v51  ;;  %v544_v57 = vmov -inf   ;;  %v66_v58 = vlaneseq }
   0x2   :  { %v457_v3 = vpack.c.bf16 %v49_v1, %v48_v0  ;;  %v32_v4 = vld [vmem:[%s812_s2] sm:$0xff]  ;;  %v33_v5 = vld [vmem:[%s812_s2 + $0x8] sm:$0xff]  ;;  %v50_v6 = vld [vmem:[%s812_s2 + $0x90] sm:$0xff]  ;;  %27 = vst.msk [vmem:[#allocation3 + $0x8] sm:$0xff] %vm23_vm2, %v543_v54 }
   0x3   :  { %v460_v7 = vpack.c.bf16 %v33_v5, %v32_v4  ;;  %v51_v8 = vld [vmem:[%s812_s2 + $0x98] sm:$0xff]  ;;  %v34_v10 = vld [vmem:[%s812_s2 + $0x10] sm:$0xff]  ;;  %v52_v12 = vld [vmem:[%s812_s2 + $0xa0] sm:$0xff]  ;;  %28 = vst.msk [vmem:[#allocation4] sm:$0xff] %vm23_vm2, %v543_v54  ;;  %v67_v59 = vshrl.u32 %v66_v58, 7 }
   0x4   :  { %459 = vmatprep.subr.msk.bf16.mxu0 %vm583_vm1, %v457_v3  ;;  %505 = vmatprep.subr.msk.bf16.mxu1 %vm583_vm1, %v457_v3  ;;  %v463_v9 = vpack.c.bf16 %v51_v8, %v50_v6  ;;  %v35_v11 = vld [vmem:[%s812_s2 + $0x18] sm:$0xff]  ;;  %v53_v13 = vld [vmem:[%s812_s2 + $0xa8] sm:$0xff]  ;;  %v626_v16 = vld [vmem:[%s813_s1] sm:$0xff]  ;;  %29 = vst.msk [vmem:[#allocation4 + $0x8] sm:$0xff] %vm23_vm2, %v543_v54 }
   0x5   :  { %462 = vmatpush3.bf16.xpose.msk.msra.mxu0 %vm583_vm1, %v460_v7  ;;  %513 = vmatpush3.bf16.xpose.msk.msra.mxu1 %vm583_vm1, %v460_v7  ;;  %v466_v14 = vpack.c.bf16 %v35_v11, %v34_v10  ;;  %v469_v15 = vpack.c.bf16 %v53_v13, %v52_v12  ;;  %v631_v17 = vld [vmem:[%s813_s1 + $0x8] sm:$0xff]  ;;  %v36_v18 = vld [vmem:[%s812_s2 + $0x20] sm:$0xff]  ;;  %v54_v20 = vld [vmem:[%s812_s2 + $0xb0] sm:$0xff]  ;;  %24 = vst.msk [vmem:[#allocation2] sm:$0xff] %vm23_vm2, %v544_v57  ;;  %v68_v60 = vsub.s32 0, %v67_v59  ;;  %v72_v62 = vsub.s32 1, %v67_v59 }
   0x6   :  { %465 = vmatprep.subr.msk.bf16.mxu0 %vm583_vm1, %v463_v9  ;;  %506 = vmatprep.subr.msk.bf16.mxu1 %vm583_vm1, %v463_v9  ;;  %v37_v19 = vld [vmem:[%s812_s2 + $0x28] sm:$0xff]  ;;  %v55_v21 = vld [vmem:[%s812_s2 + $0xb8] sm:$0xff]  ;;  %v38_v24 = vld [vmem:[%s812_s2 + $0x30] sm:$0xff]  ;;  %25 = vst.msk [vmem:[#allocation2 + $0x8] sm:$0xff] %vm23_vm2, %v544_v57 }
   0x7   :  { %453 = vmatprep.mubr.msk.f32.mxu0 %vm76_vm0, %v626_v16  ;;  %455 = vmatprep.mubr.msk.f32.mxu1 %vm76_vm0, %v631_v17  ;;  %v472_v22 = vpack.c.bf16 %v37_v19, %v36_v18  ;;  %v475_v23 = vpack.c.bf16 %v55_v21, %v54_v20  ;;  %v39_v25 = vld [vmem:[%s812_s2 + $0x38] sm:$0xff]  ;;  %v56_v26 = vld [vmem:[%s812_s2 + $0xc0] sm:$0xff]  ;;  %v57_v27 = vld [vmem:[%s812_s2 + $0xc8] sm:$0xff]  ;;  %v257_v18 = vand.u32 127, %v66_v58 }
   0x8   :  { %v478_v28 = vpack.c.bf16 %v39_v25, %v38_v24  ;;  %v481_v29 = vpack.c.bf16 %v57_v27, %v56_v26  ;;  %v40_v30 = vld [vmem:[%s812_s2 + $0x40] sm:$0xff]  ;;  %v41_v31 = vld [vmem:[%s812_s2 + $0x48] sm:$0xff]  ;;  %v58_v32 = vld [vmem:[%s812_s2 + $0xd0] sm:$0xff] }
   0x9   :  { %v59_v33 = vld [vmem:[%s812_s2 + $0xd8] sm:$0xff]  ;;  %v484_v34 = vpack.c.bf16 %v41_v31, %v40_v30  ;;  %v42_v36 = vld [vmem:[%s812_s2 + $0x50] sm:$0xff]  ;;  %v60_v38 = vld [vmem:[%s812_s2 + $0xe0] sm:$0xff]  ;;  %v258_v20 = vadd.s32 128, %v257_v18 }
   0xa   :  { %v487_v35 = vpack.c.bf16 %v59_v33, %v58_v32  ;;  %v43_v37 = vld [vmem:[%s812_s2 + $0x58] sm:$0xff]  ;;  %v61_v39 = vld [vmem:[%s812_s2 + $0xe8] sm:$0xff]  ;;  %v44_v42 = vld [vmem:[%s812_s2 + $0x60] sm:$0xff] }
   0xb   :  { %v490_v40 = vpack.c.bf16 %v43_v37, %v42_v36  ;;  %v493_v41 = vpack.c.bf16 %v61_v39, %v60_v38  ;;  %v45_v43 = vld [vmem:[%s812_s2 + $0x68] sm:$0xff]  ;;  %v62_v44 = vld [vmem:[%s812_s2 + $0xf0] sm:$0xff]  ;;  %v63_v45 = vld [vmem:[%s812_s2 + $0xf8] sm:$0xff] }
   0xc   :  { %v496_v46 = vpack.c.bf16 %v45_v43, %v44_v42  ;;  %v499_v47 = vpack.c.bf16 %v63_v45, %v62_v44  ;;  %v46_v48 = vld [vmem:[%s812_s2 + $0x70] sm:$0xff]  ;;  %v47_v49 = vld [vmem:[%s812_s2 + $0x78] sm:$0xff]  ;;  %v762_v52 = vld [vmem:[%s814_s0] sm:$0xff] }
   0xd   :  { %468 = vmatpush3.bf16.xpose.msk.msra.mxu0 %vm583_vm1, %v466_v14  ;;  %514 = vmatpush3.bf16.xpose.msk.msra.mxu1 %vm583_vm1, %v466_v14  ;;  %v502_v50 = vpack.c.bf16 %v47_v49, %v46_v48  ;;  %v767_v53 = vld [vmem:[%s814_s0 + $0x8] sm:$0xff]  ;;  %vm361_vm3 = vcmp.ne.s32.totalorder %v762_v52, 4294967196  ;;  %v64_v61 = vld [vmem:[%s816_s3] sm:$0x3]  ;;  %v308_v51 = vld [vmem:[#allocation3] sm:$0xff] }
   0xe   :  { %471 = vmatprep.subr.msk.bf16.mxu0 %vm583_vm1, %v469_v15  ;;  %507 = vmatprep.subr.msk.bf16.mxu1 %vm583_vm1, %v469_v15  ;;  %vm362_vm4 = vcmp.ne.s32.totalorder %v767_v53, 4294967196  ;;  %v419_v55 = vsel %vm361_vm3, 1.0, %v543_v54  ;;  %v69_v63 = vrot.slane %v64_v61, %v68_v60  ;;  %v73_v0 = vrot.slane %v64_v61, %v72_v62  ;;  %v292_v11 = vld [vmem:[#allocation2] sm:$0xff]  ;;  %v293_v14 = vld [vmem:[#allocation2 + $0x8] sm:$0xff]  ;;  %v309_v57 = vld [vmem:[#allocation3 + $0x8] sm:$0xff] }
   0xf   :  { %v420_v56 = vsel %vm362_vm4, 1.0, %v543_v54  ;;  %375 = vst.msk [vmem:[%s815_s5] sm:$0xff] %vm23_vm2, %v419_v55  ;;  %v265_v45 = vld [vmem:[#allocation4] sm:$0xff]  ;;  %v266_v62 = vld [vmem:[#allocation4 + $0x8] sm:$0xff] }
  0x10   :  { %376 = vst.msk [vmem:[%s815_s5 + $0x8] sm:$0xff] %vm23_vm2, %v420_v56 }
  0x15   :  { %474 = vmatpush3.bf16.xpose.msk.msra.mxu0 %vm583_vm1, %v472_v22  ;;  %515 = vmatpush3.bf16.xpose.msk.msra.mxu1 %vm583_vm1, %v472_v22 }
  0x16   :  { %477 = vmatprep.subr.msk.bf16.mxu0 %vm583_vm1, %v475_v23  ;;  %508 = vmatprep.subr.msk.bf16.mxu1 %vm583_vm1, %v475_v23 }
  0x1d   :  { %480 = vmatpush3.bf16.xpose.msk.msra.mxu0 %vm583_vm1, %v478_v28  ;;  %516 = vmatpush3.bf16.xpose.msk.msra.mxu1 %vm583_vm1, %v478_v28 }
  0x1e   :  { %483 = vmatprep.subr.msk.bf16.mxu0 %vm583_vm1, %v481_v29  ;;  %509 = vmatprep.subr.msk.bf16.mxu1 %vm583_vm1, %v481_v29 }
  0x25   :  { %486 = vmatpush3.bf16.xpose.msk.msra.mxu0 %vm583_vm1, %v484_v34  ;;  %517 = vmatpush3.bf16.xpose.msk.msra.mxu1 %vm583_vm1, %v484_v34 }
  0x26   :  { %489 = vmatprep.subr.msk.bf16.mxu0 %vm583_vm1, %v487_v35  ;;  %510 = vmatprep.subr.msk.bf16.mxu1 %vm583_vm1, %v487_v35 }
  0x2d   :  { %492 = vmatpush3.bf16.xpose.msk.msra.mxu0 %vm583_vm1, %v490_v40  ;;  %518 = vmatpush3.bf16.xpose.msk.msra.mxu1 %vm583_vm1, %v490_v40 }
  0x2e   :  { %495 = vmatprep.subr.msk.bf16.mxu0 %vm583_vm1, %v493_v41  ;;  %511 = vmatprep.subr.msk.bf16.mxu1 %vm583_vm1, %v493_v41 }
  0x35   :  { %498 = vmatpush3.bf16.xpose.msk.msra.mxu0 %vm583_vm1, %v496_v46  ;;  %519 = vmatpush3.bf16.xpose.msk.msra.mxu1 %vm583_vm1, %v496_v46 }
  0x36   :  { %501 = vmatprep.subr.msk.bf16.mxu0 %vm583_vm1, %v499_v47  ;;  %512 = vmatprep.subr.msk.bf16.mxu1 %vm583_vm1, %v499_v47 }
  0x3d   :  { %504 = vmatpush3.bf16.xpose.msk.msra.mxu0 %vm583_vm1, %v502_v50  ;;  %520 = vmatpush3.bf16.xpose.msk.msra.mxu1 %vm583_vm1, %v502_v50 }
  0x44   :  { %454 = vmatmul.mubr.msk.f32.vlgmr.msra.gmra.mrb[0].mxu0 %vm76_vm0, %v626_v16  ;;  %456 = vmatmul.mubr.msk.f32.vlgmr.msra.gmra.mrb[0].mxu1 %vm76_vm0, %v631_v17 }
 0x117   :  { %v245_v1 = vpop.f32.mrb[0].mxu0  ;;  %v251_v2 = vpop.f32.mrb[0].mxu1 }
 0x118   :  { %v246_v3 = vadd.f32 %v245_v1, %v69_v63  ;;  %v247_v4 = vpop.f32.mrb[1].mxu0  ;;  %v253_v5 = vpop.f32.mrb[1].mxu1  ;;  %v252_v7 = vadd.f32 %v251_v2, %v69_v63 }
 0x119   :  { %v248_v6 = vadd.f32 %v247_v4, %v73_v0  ;;  %v254_v8 = vadd.f32 %v253_v5, %v73_v0 }
 0x11b   :  { %v294_v9 = vmax.f32 %v246_v3, %v248_v6  ;;  %v297_v10 = vmax.f32 %v252_v7, %v254_v8 }
 0x11d   :  { %295 = vmax.xlane.f32.xlu0 %v294_v9 }
 0x121   :  { %298 = vmax.xlane.f32.xlu0 %v297_v10 }
 0x137   :  { %268 = vperm.xlu0 %525, %v762_v52  }
 0x1aa   :  { %v296_v12 = vpop.xlane.xlu0 %295 }
 0x1ab   :  { %v300_v13 = vmax.f32 %v292_v11, %v296_v12 }
 0x1ad   :  { %v302_v15 = vsub.f32 %v292_v11, %v300_v13  ;;  %344 = vst.msk [vmem:[#allocation2] sm:$0xff] %vm23_vm2, %v300_v13  ;;  %314 = vperm.xlu1 %524, %v300_v13  }
 0x1ae   :  { %v299_v16 = vpop.xlane.xlu0 %298 }
 0x1af   :  { %v301_v17 = vmax.f32 %v293_v14, %v299_v16  ;;  %v304_v48 = vmul.f32 1.442695, %v302_v15 }
 0x1b1   :  { %v303_v19 = vsub.f32 %v293_v14, %v301_v17  ;;  %345 = vst.msk [vmem:[#allocation2 + $0x8] sm:$0xff] %vm23_vm2, %v301_v17  ;;  %319 = vperm.xlu1 %524, %v301_v17  }
 0x1b3   :  { %v306_v49 = vmul.f32 1.442695, %v303_v19 }
 0x1b4   :  { %v349_v5 = vld [vmem:[#allocation2] sm:$0xff] }
 0x1b5   :  { %271 = vperm.xlu1 %524, %v767_v53  }
 0x1b6   :  { %v269_v21 = vpop.permute.xlu0 %268 }
 0x1b7   :  { %vm273_vm5 = vcmp.eq.s32.totalorder %v257_v18, %v269_v21  ;;  %vm274_vm6 = vcmp.eq.s32.totalorder %v258_v20, %v269_v21 }
 0x1b8   :  { %v277_v22 = vsel %vm273_vm5, %v246_v3, 0.0  ;;  %v278_v23 = vsel %vm274_vm6, %v248_v6, 0.0  ;;  %v350_v11 = vld [vmem:[#allocation2 + $0x8] sm:$0xff] }
 0x1b9   :  { %v281_v24 = vadd.f32 %v278_v23, %v277_v22 }
 0x1bb   :  { %282 = vadd.xlane.f32.xlu0 %v281_v24 }
 0x22c   :  { %v315_v25 = vpop.permute.xlu1 %314 }
 0x22d   :  { %v322_v26 = vsub.f32 %v246_v3, %v315_v25  ;;  %v323_v27 = vsub.f32 %v248_v6, %v315_v25 }
 0x22f   :  { %v326_v28 = vmul.f32 1.442695, %v322_v26  ;;  %v328_v29 = vmul.f32 1.442695, %v323_v27 }
 0x230   :  { %v320_v30 = vpop.permute.xlu1 %319 }
 0x231   :  { %526 = vpow2.f32 %v326_v28  ;;  %v324_v31 = vsub.f32 %v252_v7, %v320_v30  ;;  %v325_v32 = vsub.f32 %v254_v8, %v320_v30 }
 0x232   :  { %528 = vpow2.f32 %v328_v29 }
 0x233   :  { %v330_v33 = vmul.f32 1.442695, %v324_v31  ;;  %v332_v34 = vmul.f32 1.442695, %v325_v32 }
 0x234   :  { %v272_v37 = vpop.permute.xlu1 %271 }
 0x235   :  { %530 = vpow2.f32 %v330_v33  ;;  %vm275_vm7 = vcmp.eq.s32.totalorder %v257_v18, %v272_v37  ;;  %vm276_vm8 = vcmp.eq.s32.totalorder %v258_v20, %v272_v37 }
 0x236   :  { %532 = vpow2.f32 %v332_v34  ;;  %v279_v42 = vsel %vm275_vm7, %v252_v7, 0.0  ;;  %v280_v43 = vsel %vm276_vm8, %v254_v8, 0.0 }
 0x237   :  { %v284_v44 = vadd.f32 %v280_v43, %v279_v42  ;;  %534 = vpow2.f32 %v304_v48 }
 0x238   :  { %536 = vpow2.f32 %v306_v49 }
 0x23b   :  { %v527_v35 = vpop.eup %526 }
 0x23c   :  { %v529_v36 = vpop.eup %528 }
 0x23d   :  { %v334_v38 = vadd.f32 %v529_v36, %v527_v35 }
 0x23f   :  { %v531_v39 = vpop.eup %530  ;;  %335 = vadd.xlane.f32.xlu1 %v334_v38 }
 0x240   :  { %v533_v40 = vpop.eup %532 }
 0x241   :  { %v337_v41 = vadd.f32 %v533_v40, %v531_v39  ;;  %v535_v50 = vpop.eup %534 }
 0x242   :  { %v310_v54 = vmul.f32 %v535_v50, %v308_v51  ;;  %v537_v55 = vpop.eup %536 }
 0x243   :  { %338 = vadd.xlane.f32.xlu1 %v337_v41  ;;  %v311_v59 = vmul.f32 %v537_v55, %v309_v57 }
 0x247   :  { %285 = vadd.xlane.f32.xlu1 %v284_v44 }
 0x248   :  { %v283_v46 = vpop.xlane.xlu0 %282 }
 0x249   :  { %v287_v47 = vadd.f32 %v283_v46, %v265_v45 }
 0x24b   :  { %290 = vst.msk [vmem:[#allocation4] sm:$0xff] %vm23_vm2, %v287_v47 }
 0x252   :  { %v363_v8 = vld [vmem:[#allocation4] sm:$0xff] }
 0x2cc   :  { %v336_v56 = vpop.xlane.xlu1 %335 }
 0x2cd   :  { %v340_v58 = vadd.f32 %v336_v56, %v310_v54 }
 0x2cf   :  { %342 = vst.msk [vmem:[#allocation3] sm:$0xff] %vm23_vm2, %v340_v58 }
 0x2d0   :  { %v339_v60 = vpop.xlane.xlu1 %338 }
 0x2d1   :  { %v341_v61 = vadd.f32 %v339_v60, %v311_v59 }
 0x2d3   :  { %343 = vst.msk [vmem:[#allocation3 + $0x8] sm:$0xff] %vm23_vm2, %v341_v61 }
 0x2d4   :  { %v286_v63 = vpop.xlane.xlu1 %285 }
 0x2d5   :  { %v288_v0 = vadd.f32 %v286_v63, %v266_v62 }
 0x2d6   :  { %v351_v1 = vld [vmem:[#allocation3] sm:$0xff] }
 0x2d7   :  { %538 = vlog2.f32 %v351_v1  ;;  %291 = vst.msk [vmem:[#allocation4 + $0x8] sm:$0xff] %vm23_vm2, %v288_v0 }
 0x2da   :  { %v352_v2 = vld [vmem:[#allocation3 + $0x8] sm:$0xff] }
 0x2db   :  { %540 = vlog2.f32 %v352_v2 }
 0x2de   :  { %v364_v14 = vld [vmem:[#allocation4 + $0x8] sm:$0xff] }
 0x2e1   :  { %v539_v3 = vpop.eup %538 }
 0x2e2   :  { %v354_v4 = vmul.f32 0.6931472, %v539_v3 }
 0x2e4   :  { %v357_v6 = vadd.f32 %v354_v4, %v349_v5 }
 0x2e5   :  { %v541_v7 = vpop.eup %540 }
 0x2e6   :  { %v365_v9 = vsub.f32 %v357_v6, %v363_v8  ;;  %v356_v10 = vmul.f32 0.6931472, %v541_v7 }
 0x2e8   :  { %v367_v12 = vsel %vm361_vm3, %v365_v9, 0.0  ;;  %v358_v13 = vadd.f32 %v356_v10, %v350_v11 }
 0x2e9   :  { %369 = vst.msk [vmem:[%s817_s4] sm:$0xff] %vm23_vm2, %v367_v12 }
 0x2ea   :  { %v366_v15 = vsub.f32 %v358_v13, %v364_v14 }
 0x2ec   :  { %v368_v16 = vsel %vm362_vm4, %v366_v15, 0.0 }
 0x2ed   :  { %370 = vst.msk [vmem:[%s817_s4 + $0x8] sm:$0xff] %vm23_vm2, %v368_v16 }

</bundles_post_ra>
